<compile_context>
chip_gen: v5e
topology: v5e:2x2
jax: 0.10.0
libtpu: 0.0.40
codegen_flags: <defaults>
</compile_context>

<pallas_src>
import numpy as np
import jax
import jax.numpy as jnp
from jax import lax
from jax.experimental import pallas as pl
from jax.experimental.pallas import tpu as pltpu

# ---------------- synthetic "config" (small shapes) ----------------
NUM_CLASS = 5      # config.num_class
C = 4              # config.C   (input height, fully consumed by conv2)
NH = 2             # config.Nh  (x_cca branch; discarded by forward())
T = 16             # config.T   (input width)
N = 2              # batch
F = 120            # conv channel count
TW = T // 2        # width after stride-2 conv3
KW = 10            # conv4 kernel width ('same': pad left 4, right 5 like torch)

K_IN = 3 * C * T           # 192  flattened input features
MID = F * TW               # 960  pre/post-ReLU features (channel-major flatten)
K_PAD = 256                # lane-padded input features (+1 homogeneous col fits)
MID_PAD = 1024             # lane-padded mid features   (+1 homogeneous col fits)
OUT_ROWS = 8               # compact Wout rows (5 classes + padding to sublane 8)
N_PAD = 16                 # sublane-padded batch (bf16 packs (16, 128) per vreg)


# --------------------------- Pallas kernel ---------------------------
def siamese_kernel(x_ref, a_ref, w_ref, out_ref):
    # (16,256)bf16 @ (256,1024)bf16 -> f32 : pre-ReLU features, b_mid folded
    # in via the homogeneous column x[:, K_IN] == 1.
    h = jnp.dot(x_ref[...], a_ref[...], preferred_element_type=jnp.float32)
    h = jnp.maximum(h, 0.0).astype(jnp.bfloat16)   # ReLU; relu(1)=1 keeps hom. coord
    # (16,1024) contracted against (8,1024) on the last axis (h @ Wc^T):
    # logits (16, 8), b_out folded in via Wc[:, MID] * h[:, MID]==1.
    out_ref[...] = lax.dot_general(
        h, w_ref[...],
        dimension_numbers=(((1,), (1,)), ((), ())),
        preferred_element_type=jnp.float32)


# --------------------------- parameters ------------------------------
def init_params(key):
    ks = jax.random.split(key, 10)
    u = lambda k, shape, fan: jax.random.uniform(
        k, shape, jnp.float32, -1.0 / np.sqrt(fan), 1.0 / np.sqrt(fan))
    # PyTorch-layout parameters, squeezed into convenient dense forms.
    w1_t = u(ks[0], (1, 3, 1, 1), 3)
    b1_t = u(ks[1], (1,), 3)
    w2_t = u(ks[2], (F, 1, C, 1), C)
    b2_t = u(ks[3], (F,), C)
    w3_t = u(ks[4], (F, F, 1, 2), F * 2)
    b3_t = u(ks[5], (F,), F * 2)
    w4_t = u(ks[6], (F, F, 1, KW), F * KW)
    b4_t = u(ks[7], (F,), F * KW)
    wfc_t = u(ks[8], (NUM_CLASS, F * TW), F * TW)
    bfc_t = u(ks[9], (NUM_CLASS,), F * TW)
    return dict(
        w1=w1_t[0, :, 0, 0], b1=b1_t[0],
        w2=w2_t[:, 0, :, 0], b2=b2_t,
        w3a=w3_t[:, :, 0, 0], w3b=w3_t[:, :, 0, 1], b3=b3_t,
        w4=jnp.transpose(w4_t[:, :, 0, :], (2, 0, 1)),   # (KW, F_out, F_in)
        b4=b4_t,
        wfc=wfc_t, bfc=bfc_t,
    )


def fold_dense(p):
    """Fold the affine stages around the single ReLU into two f32 dense maps.

      x3     = x_flat @ A^T + b_mid          A: (F*TW, 3*C*T)
      logits = relu(x3) @ Wout^T + b_out     Wout: (NUM_CLASS, F*TW)
    """
    # conv1 o conv2:  x2[o,w] = sum_{c,h} w12[o,c,h] x[c,h,w] + b12[o]
    w12 = jnp.einsum('oh,c->och', p['w2'], p['w1'])               # (F, 3, C)
    b12 = p['b1'] * jnp.sum(p['w2'], axis=1) + p['b2']            # (F,)
    # conv3 (kernel (1,2), stride 2) on top of that
    w3a12 = jnp.einsum('oi,ich->och', p['w3a'], w12)              # (F, 3, C)
    w3b12 = jnp.einsum('oi,ich->och', p['w3b'], w12)              # (F, 3, C)
    wv = jnp.arange(T)[None, :]
    vv = jnp.arange(TW)[:, None]
    sel_e = (wv == 2 * vv).astype(jnp.float32)                    # (TW, T)
    sel_o = (wv == 2 * vv + 1).astype(jnp.float32)                # (TW, T)
    A = (jnp.einsum('och,vw->ovchw', w3a12, sel_e)
         + jnp.einsum('och,vw->ovchw', w3b12, sel_o))             # (F,TW,3,C,T)
    A = A.reshape(MID, K_IN)
    b_mid = (p['w3a'] + p['w3b']) @ b12 + p['b3']                 # (F,)
    b_mid = jnp.broadcast_to(b_mid[:, None], (F, TW)).reshape(MID)

    # conv4 ('same', kernel (1,KW), torch pads left 4 / right 5) o flatten o fc
    wfc3 = p['wfc'].reshape(NUM_CLASS, F, TW)                     # (cls, o, v)
    vv2 = jnp.arange(TW)[:, None, None]
    kk = jnp.arange(KW)[None, :, None]
    uu = jnp.arange(TW)[None, None, :]
    shift = (vv2 + kk - 4 == uu).astype(jnp.float32)              # (TW, KW, TW)
    w4t = jnp.transpose(p['w4'], (1, 2, 0))                       # (o, i, k)
    Wout = jnp.einsum('cov,oik,vku->ciu', wfc3, w4t, shift).reshape(NUM_CLASS, MID)
    b_out = jnp.einsum('cov,o->c', wfc3, p['b4']) + p['bfc']      # (NUM_CLASS,)
    return A, b_mid, Wout, b_out


def pack_operands(A, b_mid, Wout, b_out):
    """Pack the folded maps into lane-dense bf16 kernel operands.

    Biases ride a homogeneous coordinate: x_pad[:, K_IN] = 1, a_pad row K_IN
    carries b_mid, a_pad[K_IN, MID] = 1 keeps the 1 alive through the ReLU,
    and wout_c[:, MID] carries b_out.
    """
    a_pad = jnp.zeros((K_PAD, MID_PAD), jnp.float32)
    a_pad = a_pad.at[:K_IN, :MID].set(A.T)
    a_pad = a_pad.at[K_IN, :MID].set(b_mid)          # bias row (hits x[:,K_IN]==1)
    a_pad = a_pad.at[K_IN, MID].set(1.0)             # homogeneous 1 -> h[:,MID]==1
    wout_c = jnp.zeros((OUT_ROWS, MID_PAD), jnp.float32)
    wout_c = wout_c.at[:NUM_CLASS, :MID].set(Wout)
    wout_c = wout_c.at[:NUM_CLASS, MID].set(b_out)   # b_out column
    return a_pad.astype(jnp.bfloat16), wout_c.astype(jnp.bfloat16)


# ----------------------------- wrapper --------------------------------
def _pallas_forward(x_pad, a_pad, wout_c):
    vmem = pl.BlockSpec(memory_space=pltpu.MemorySpace.VMEM)
    flops = 2 * N_PAD * K_PAD * MID_PAD + 2 * N_PAD * MID_PAD * OUT_ROWS
    bytes_accessed = (2 * (N_PAD * K_PAD + K_PAD * MID_PAD + OUT_ROWS * MID_PAD)
                      + 4 * N_PAD * OUT_ROWS)
    return pl.pallas_call(
        siamese_kernel,
        out_shape=jax.ShapeDtypeStruct((N_PAD, OUT_ROWS), jnp.float32),
        in_specs=[vmem, vmem, vmem],
        out_specs=vmem,
        cost_estimate=pl.CostEstimate(flops=flops, transcendentals=0,
                                      bytes_accessed=bytes_accessed),
    )(x_pad, a_pad, wout_c)


@jax.jit
def siamese_forward(x, x_cca, folded):
    # x_cca only feeds branches whose results forward() discards -> unused.
    del x_cca
    a_pad, wout_c = folded
    n = x.shape[0]
    x_flat = x.reshape(n, K_IN).astype(jnp.bfloat16)
    x_pad = jnp.zeros((N_PAD, K_PAD), jnp.bfloat16)
    x_pad = x_pad.at[:n, :K_IN].set(x_flat)
    x_pad = x_pad.at[:, K_IN].set(1.0)                # homogeneous coordinate
    out = _pallas_forward(x_pad, a_pad, wout_c)
    return jnp.squeeze(out[:n, :NUM_CLASS])           # torch.squeeze; no-op for (2,5)


# --------------------------- pure-JAX reference -----------------------
def ref_forward(x, p):
    n = x.shape[0]
    x1 = jnp.einsum('nchw,c->nhw', x, p['w1']) + p['b1']                     # (n,C,T)
    x2 = jnp.einsum('oh,nhw->now', p['w2'], x1) + p['b2'][None, :, None]     # (n,F,T)
    x2r = x2.reshape(n, F, TW, 2)
    x3 = (jnp.einsum('oi,niv->nov', p['w3a'], x2r[..., 0])
          + jnp.einsum('oi,niv->nov', p['w3b'], x2r[..., 1])
          + p['b3'][None, :, None])                                          # (n,F,TW)
    x3r = jnp.maximum(x3, 0.0)
    x3p = jnp.pad(x3r, ((0, 0), (0, 0), (4, 5)))
    x4 = sum(jnp.einsum('oi,niv->nov', p['w4'][k], x3p[:, :, k:k + TW])
             for k in range(KW)) + p['b4'][None, :, None]                    # (n,F,TW)
    flat = x4.reshape(n, F * TW)
    return flat @ p['wfc'].T + p['bfc']


if __name__ == "__main__":
    key = jax.random.PRNGKey(0)
    k_p, k_x, k_c = jax.random.split(key, 3)
    params = init_params(k_p)
    A, b_mid, Wout, b_out = fold_dense(params)
    folded = pack_operands(A, b_mid, Wout, b_out)

    x = jax.random.normal(k_x, (N, 3, C, T), jnp.float32)
    x_cca = jax.random.normal(k_c, (N, NUM_CLASS, 2 * NH, T), jnp.float32)

    out = siamese_forward(x, x_cca, folded)
    out = jax.block_until_ready(out)
    assert out.shape == (N, NUM_CLASS)

    ref = ref_forward(x, params)

    # (1) the f32 offline folding reproduces the conv network exactly (tight).
    x_flat = x.reshape(N, K_IN)
    dense = jnp.maximum(x_flat @ A.T + b_mid[None, :], 0.0) @ Wout.T + b_out[None, :]
    assert np.allclose(np.asarray(dense), np.asarray(ref), rtol=1e-4, atol=2e-4)

    # (2) the bf16-operand Pallas kernel matches within quantization tolerance.
    assert np.allclose(np.asarray(out), np.asarray(ref), rtol=2e-2, atol=2e-2)

    print("KERNEL_OK")
</pallas_src>

<mosaic_0001>
module attributes {stable_mosaic.version = 11 : i64} {
  func.func @siamese_kernel(%arg0: memref<16x256xbf16, #tpu.memory_space<vmem>>, %arg1: memref<256x1024xbf16, #tpu.memory_space<vmem>>, %arg2: memref<8x1024xbf16, #tpu.memory_space<vmem>>, %arg3: memref<16x8xf32, #tpu.memory_space<vmem>>) attributes {dimension_semantics = [], scalar_prefetch = 0 : i64, scratch_operands = 0 : i64, tpu.core_type = #tpu.core_type<tc>} {
    %c0 = arith.constant 0 : index
    %c0_0 = arith.constant 0 : index
    %0 = vector.load %arg0[%c0, %c0_0] : memref<16x256xbf16, #tpu.memory_space<vmem>>, vector<16x256xbf16>
    %c0_1 = arith.constant 0 : index
    %c0_2 = arith.constant 0 : index
    %1 = vector.load %arg1[%c0_1, %c0_2] : memref<256x1024xbf16, #tpu.memory_space<vmem>>, vector<256x1024xbf16>
    %cst = arith.constant dense<0.000000e+00> : vector<16x1024xf32>
    %2 = tpu.matmul %0, %1, %cst {dimension_numbers = #tpu.dot_dimension_numbers<[1], [0], [0], [1], [0, 0, 1, 1], [], []>} : vector<16x256xbf16>, vector<256x1024xbf16>, vector<16x1024xf32> -> vector<16x1024xf32>
    %cst_3 = arith.constant 0.000000e+00 : f32
    %3 = vector.broadcast %cst_3 : f32 to vector<16x1024xf32>
    %4 = arith.maximumf %2, %3 : vector<16x1024xf32>
    %5 = arith.truncf %4 : vector<16x1024xf32> to vector<16x1024xbf16>
    %c0_4 = arith.constant 0 : index
    %c0_5 = arith.constant 0 : index
    %6 = vector.load %arg2[%c0_4, %c0_5] : memref<8x1024xbf16, #tpu.memory_space<vmem>>, vector<8x1024xbf16>
    %cst_6 = arith.constant dense<0.000000e+00> : vector<16x8xf32>
    %7 = tpu.matmul %5, %6, %cst_6 {dimension_numbers = #tpu.dot_dimension_numbers<[1], [1], [0], [0], [0, 0, 1, 0], [], []>} : vector<16x1024xbf16>, vector<8x1024xbf16>, vector<16x8xf32> -> vector<16x8xf32>
    %c0_7 = arith.constant 0 : index
    %c0_8 = arith.constant 0 : index
    %8 = vector.load %arg3[%c0_7, %c0_8] : memref<16x8xf32, #tpu.memory_space<vmem>>, vector<16x8xf32>
    tpu.vector_store %arg3[%c0_7, %c0_8], %7 {strides = array<i32>} : memref<16x8xf32, #tpu.memory_space<vmem>>, vector<16x8xf32>,
    return
  }
}

</mosaic_0001>

<bundles_post_ra>
// kernel: siamese_forward.1
= control target key start
LH: loop header
LB: loop body
LE: loop exit
PB: predicated region body
PF: predicated region fallthrough
CT: control target
= control target key end

     0   :  { %8 = vsyncpa [#allocation3], 0  ;;  %s1890_s15 = smov [#allocation2]   ;;  %s1891_s17 = smov 512   ;;  %s1966_s0 = inlined_call_operand.vmem [shape: bf16[16,256], index: 0, kind: input, shape index: {}]   ;;  %s1967_s1 = inlined_call_operand.hbm [shape: bf16[256,1024], index: 1, kind: input, shape index: {}]   ;;  %s1968_s2 = inlined_call_operand.vmem [shape: bf16[8,1024], index: 2, kind: input, shape index: {}]   ;;  %s1969_s3 = inlined_call_operand.vmem [shape: f32[16,8], index: 3, kind: output, shape index: {}]  }
   0x1   :  { %s15_s14 = sshll.u32 %s1967_s1, 4  ;;  %s17_s16 = sshll.u32 %s1890_s15, 4  ;;  %s16_s14 = int_to_ptr.hbm [resolvable:$true] %s15_s14  ;;  %s18_s16 = int_to_ptr.vmem [resolvable:$true] %s17_s16 }
   0x2   :  { %s1892_s18 = smov 32  }
   0x3   :  { %23 = dma.hbm_to_vmem [thread:$0]  %s16_s14, 16384, %s18_s16, [#allocation3], %s1891_s17, %s1891_s17, %s1892_s18  }
   0x4   :  { %1888 = dma.done.wait [#allocation3], 16384  }
   0x5   :  { %1889 = vsyncadd [#allocation3], 4294950912  ;;  %v1445_v0 = vld [vmem:[#allocation2 + $0x1c0] sm:$0xf]  ;;  %v1789_v5 = vld [vmem:[#allocation2 + $0x1c4] sm:$0xf] }
   0x6   :  { %v1793_v1 = vld [vmem:[#allocation2 + $0x1dc] sm:$0xf0]  ;;  %v1447_v6 = vld [vmem:[#allocation2 + $0x1e0] sm:$0xf0]  ;;  %vm1203_vm0 = vcmask 64512  }
   0x7   :  { %v1701_v2 = vld [vmem:[#allocation2 + $0x3c0] sm:$0xf]  ;;  %v1446_v3 = vor.u32 %v1793_v1, %v1445_v0  ;;  %v1450_v8 = vor.u32 %v1789_v5, %v1447_v6  ;;  %v1853_v9 = vld [vmem:[#allocation2 + $0x3c4] sm:$0xf] }
   0x8   :  { %v1857_v4 = vld [vmem:[#allocation2 + $0x3dc] sm:$0xf0]  ;;  %v1703_v10 = vld [vmem:[#allocation2 + $0x3e0] sm:$0xf0] }
   0x9   :  { %v1702_v7 = vor.u32 %v1857_v4, %v1701_v2  ;;  %v1413_v11 = vld [vmem:[#allocation2 + $0x180] sm:$0xf]  ;;  %811 = vmatpush.bf16.msra.mxu0 %v1446_v3  ;;  %v1706_v12 = vor.u32 %v1853_v9, %v1703_v10  ;;  %839 = vmatpush.bf16.msra.mxu2 %v1450_v8  ;;  %v1781_v18 = vld [vmem:[#allocation2 + $0x184] sm:$0xf] }
   0xa   :  { %v1785_v13 = vld [vmem:[#allocation2 + $0x19c] sm:$0xf0]  ;;  %v1415_v19 = vld [vmem:[#allocation2 + $0x1a0] sm:$0xf0] }
   0xb   :  { %v1669_v14 = vld [vmem:[#allocation2 + $0x380] sm:$0xf]  ;;  %825 = vmatpush.bf16.msra.mxu1 %v1702_v7  ;;  %v1414_v16 = vor.u32 %v1785_v13, %v1413_v11  ;;  %v1845_v20 = vld [vmem:[#allocation2 + $0x384] sm:$0xf]  ;;  %853 = vmatpush.bf16.msra.mxu3 %v1706_v12  ;;  %v1418_v21 = vor.u32 %v1781_v18, %v1415_v19 }
   0xc   :  { %v1849_v15 = vld [vmem:[#allocation2 + $0x39c] sm:$0xf0]  ;;  %v1671_v22 = vld [vmem:[#allocation2 + $0x3a0] sm:$0xf0] }
   0xd   :  { %v1670_v17 = vor.u32 %v1849_v15, %v1669_v14  ;;  %v1381_v23 = vld [vmem:[#allocation2 + $0x140] sm:$0xf]  ;;  %v1674_v25 = vor.u32 %v1845_v20, %v1671_v22  ;;  %v1773_v28 = vld [vmem:[#allocation2 + $0x144] sm:$0xf]  ;;  %812 = vmatpush.bf16.msra.mxu0 %v1414_v16  ;;  %840 = vmatpush.bf16.msra.mxu2 %v1418_v21 }
   0xe   :  { %v1777_v24 = vld [vmem:[#allocation2 + $0x15c] sm:$0xf0]  ;;  %v1383_v30 = vld [vmem:[#allocation2 + $0x160] sm:$0xf0] }
   0xf   :  { %v1637_v26 = vld [vmem:[#allocation2 + $0x340] sm:$0xf]  ;;  %v1382_v29 = vor.u32 %v1777_v24, %v1381_v23  ;;  %v1837_v31 = vld [vmem:[#allocation2 + $0x344] sm:$0xf]  ;;  %826 = vmatpush.bf16.msra.mxu1 %v1670_v17  ;;  %v1386_v34 = vor.u32 %v1773_v28, %v1383_v30  ;;  %854 = vmatpush.bf16.msra.mxu3 %v1674_v25  ;;  %v1453_v28 = vld [vmem:[#allocation2 + $0x1c8] sm:$0xf] }
  0x10   :  { %v1841_v27 = vld [vmem:[#allocation2 + $0x35c] sm:$0xf0]  ;;  %v1639_v32 = vld [vmem:[#allocation2 + $0x360] sm:$0xf0]  ;;  %v1709_v30 = vld [vmem:[#allocation2 + $0x3c8] sm:$0xf] }
  0x11   :  { %v1638_v33 = vor.u32 %v1841_v27, %v1637_v26  ;;  %v1349_v35 = vld [vmem:[#allocation2 + $0x100] sm:$0xf]  ;;  %v1642_v38 = vor.u32 %v1837_v31, %v1639_v32  ;;  %v1765_v40 = vld [vmem:[#allocation2 + $0x104] sm:$0xf]  ;;  %813 = vmatpush.bf16.msra.mxu0 %v1382_v29  ;;  %841 = vmatpush.bf16.msra.mxu2 %v1386_v34  ;;  %v1794_v29 = vld [vmem:[#allocation2 + $0x1e4] sm:$0xf0] }
  0x12   :  { %v1769_v36 = vld [vmem:[#allocation2 + $0x11c] sm:$0xf0]  ;;  %v1351_v41 = vld [vmem:[#allocation2 + $0x120] sm:$0xf0]  ;;  %v1858_v32 = vld [vmem:[#allocation2 + $0x3e4] sm:$0xf0] }
  0x13   :  { %v1605_v37 = vld [vmem:[#allocation2 + $0x300] sm:$0xf]  ;;  %v1829_v42 = vld [vmem:[#allocation2 + $0x304] sm:$0xf]  ;;  %v1350_v44 = vor.u32 %v1769_v36, %v1349_v35  ;;  %827 = vmatpush.bf16.msra.mxu1 %v1638_v33  ;;  %v1354_v46 = vor.u32 %v1765_v40, %v1351_v41  ;;  %855 = vmatpush.bf16.msra.mxu3 %v1642_v38  ;;  %v1790_v33 = vld [vmem:[#allocation2 + $0x1cc] sm:$0xf]  ;;  %v1454_v41 = vor.u32 %v1794_v29, %v1453_v28 }
  0x14   :  { %v1833_v39 = vld [vmem:[#allocation2 + $0x31c] sm:$0xf0]  ;;  %v1607_v43 = vld [vmem:[#allocation2 + $0x320] sm:$0xf0]  ;;  %v1455_v34 = vld [vmem:[#allocation2 + $0x1e8] sm:$0xf0] }
  0x15   :  { %v1606_v45 = vor.u32 %v1833_v39, %v1605_v37  ;;  %v1317_v47 = vld [vmem:[#allocation2 + $0xc0] sm:$0xf]  ;;  %v1610_v50 = vor.u32 %v1829_v42, %v1607_v43  ;;  %v1757_v52 = vld [vmem:[#allocation2 + $0xc4] sm:$0xf]  ;;  %814 = vmatpush.bf16.msra.mxu0 %v1350_v44  ;;  %842 = vmatpush.bf16.msra.mxu2 %v1354_v46  ;;  %v1854_v37 = vld [vmem:[#allocation2 + $0x3cc] sm:$0xf]  ;;  %v1458_v46 = vor.u32 %v1790_v33, %v1455_v34 }
  0x16   :  { %v1761_v48 = vld [vmem:[#allocation2 + $0xdc] sm:$0xf0]  ;;  %v1319_v53 = vld [vmem:[#allocation2 + $0xe0] sm:$0xf0]  ;;  %v1711_v38 = vld [vmem:[#allocation2 + $0x3e8] sm:$0xf0] }
  0x17   :  { %v1573_v49 = vld [vmem:[#allocation2 + $0x2c0] sm:$0xf]  ;;  %v1821_v54 = vld [vmem:[#allocation2 + $0x2c4] sm:$0xf]  ;;  %v1318_v56 = vor.u32 %v1761_v48, %v1317_v47  ;;  %828 = vmatpush.bf16.msra.mxu1 %v1606_v45  ;;  %v1322_v58 = vor.u32 %v1757_v52, %v1319_v53  ;;  %856 = vmatpush.bf16.msra.mxu3 %v1610_v50  ;;  %v1421_v39 = vld [vmem:[#allocation2 + $0x188] sm:$0xf]  ;;  %v1710_v45 = vor.u32 %v1858_v32, %v1709_v30 }
  0x18   :  { %v1825_v51 = vld [vmem:[#allocation2 + $0x2dc] sm:$0xf0]  ;;  %v1575_v55 = vld [vmem:[#allocation2 + $0x2e0] sm:$0xf0]  ;;  %v1786_v42 = vld [vmem:[#allocation2 + $0x1a4] sm:$0xf0]  ;;  %v1714_v50 = vor.u32 %v1854_v37, %v1711_v38 }
  0x19   :  { %v1574_v57 = vor.u32 %v1825_v51, %v1573_v49  ;;  %v1285_v59 = vld [vmem:[#allocation2 + $0x80] sm:$0xf]  ;;  %v1578_v62 = vor.u32 %v1821_v54, %v1575_v55  ;;  %v1749_v0 = vld [vmem:[#allocation2 + $0x84] sm:$0xf]  ;;  %815 = vmatpush.bf16.msra.mxu0 %v1318_v56  ;;  %843 = vmatpush.bf16.msra.mxu2 %v1322_v58  ;;  %v1732_v44 = vld [vmem:[%s1966_s0 + $0x4] sm:$0xf0]  ;;  %v1422_v58 = vor.u32 %v1786_v42, %v1421_v39 }
  0x1a   :  { %v1753_v60 = vld [vmem:[#allocation2 + $0x9c] sm:$0xf0]  ;;  %v1287_v1 = vld [vmem:[#allocation2 + $0xa0] sm:$0xf0]  ;;  %v1677_v47 = vld [vmem:[#allocation2 + $0x388] sm:$0xf] }
  0x1b   :  { %v1541_v61 = vld [vmem:[#allocation2 + $0x280] sm:$0xf]  ;;  %v1813_v2 = vld [vmem:[#allocation2 + $0x284] sm:$0xf]  ;;  %v1286_v4 = vor.u32 %v1753_v60, %v1285_v59  ;;  %829 = vmatpush.bf16.msra.mxu1 %v1574_v57  ;;  %v1290_v6 = vor.u32 %v1749_v0, %v1287_v1  ;;  %857 = vmatpush.bf16.msra.mxu3 %v1578_v62  ;;  %v1215_v49 = vld [vmem:[%s1966_s0 + $0x8] sm:$0xf0] }
  0x1c   :  { %v1817_v63 = vld [vmem:[#allocation2 + $0x29c] sm:$0xf0]  ;;  %v1543_v3 = vld [vmem:[#allocation2 + $0x2a0] sm:$0xf0]  ;;  %v1850_v51 = vld [vmem:[#allocation2 + $0x3a4] sm:$0xf0] }
  0x1d   :  { %v1542_v5 = vor.u32 %v1817_v63, %v1541_v61  ;;  %v1253_v7 = vld [vmem:[#allocation2 + $0x40] sm:$0xf]  ;;  %v1546_v10 = vor.u32 %v1813_v2, %v1543_v3  ;;  %v1741_v12 = vld [vmem:[#allocation2 + $0x44] sm:$0xf]  ;;  %816 = vmatpush.bf16.msra.mxu0 %v1286_v4  ;;  %844 = vmatpush.bf16.msra.mxu2 %v1290_v6  ;;  %v1782_v52 = vld [vmem:[#allocation2 + $0x18c] sm:$0xf]  ;;  %v1678_v59 = vor.u32 %v1850_v51, %v1677_v47 }
  0x1e   :  { %v1745_v8 = vld [vmem:[#allocation2 + $0x5c] sm:$0xf0]  ;;  %v1255_v13 = vld [vmem:[#allocation2 + $0x60] sm:$0xf0]  ;;  %v1423_v53 = vld [vmem:[#allocation2 + $0x1a8] sm:$0xf0] }
  0x1f   :  { %v1509_v9 = vld [vmem:[#allocation2 + $0x240] sm:$0xf]  ;;  %v1805_v14 = vld [vmem:[#allocation2 + $0x244] sm:$0xf]  ;;  %v1254_v16 = vor.u32 %v1745_v8, %v1253_v7  ;;  %830 = vmatpush.bf16.msra.mxu1 %v1542_v5  ;;  %v1258_v20 = vor.u32 %v1741_v12, %v1255_v13  ;;  %858 = vmatpush.bf16.msra.mxu3 %v1546_v10  ;;  %v1846_v55 = vld [vmem:[#allocation2 + $0x38c] sm:$0xf]  ;;  %v1426_v60 = vor.u32 %v1782_v52, %v1423_v53 }
  0x20   :  { %v1809_v11 = vld [vmem:[#allocation2 + $0x25c] sm:$0xf0]  ;;  %v1511_v15 = vld [vmem:[#allocation2 + $0x260] sm:$0xf0]  ;;  %v1679_v56 = vld [vmem:[#allocation2 + $0x3a8] sm:$0xf0] }
  0x21   :  { %v1221_v17 = vld [vmem:[#allocation2] sm:$0xf]  ;;  %v1510_v19 = vor.u32 %v1809_v11, %v1509_v9  ;;  %v1733_v23 = vld [vmem:[#allocation2 + $0x4] sm:$0xf]  ;;  %v1514_v24 = vor.u32 %v1805_v14, %v1511_v15  ;;  %817 = vmatpush.bf16.msra.mxu0 %v1254_v16  ;;  %845 = vmatpush.bf16.msra.mxu2 %v1258_v20  ;;  %v1389_v61 = vld [vmem:[#allocation2 + $0x148] sm:$0xf]  ;;  %v1682_v0 = vor.u32 %v1846_v55, %v1679_v56 }
  0x22   :  { %v1737_v18 = vld [vmem:[#allocation2 + $0x1c] sm:$0xf0]  ;;  %v1223_v25 = vld [vmem:[#allocation2 + $0x20] sm:$0xf0]  ;;  %v1778_v62 = vld [vmem:[#allocation2 + $0x164] sm:$0xf0] }
  0x23   :  { %v1477_v21 = vld [vmem:[#allocation2 + $0x200] sm:$0xf]  ;;  %v1797_v26 = vld [vmem:[#allocation2 + $0x204] sm:$0xf]  ;;  %v1222_v31 = vor.u32 %v1737_v18, %v1221_v17  ;;  %831 = vmatpush.bf16.msra.mxu1 %v1510_v19  ;;  %v1226_v36 = vor.u32 %v1733_v23, %v1223_v25  ;;  %859 = vmatpush.bf16.msra.mxu3 %v1514_v24  ;;  %v1645_v63 = vld [vmem:[#allocation2 + $0x348] sm:$0xf]  ;;  %v1390_v6 = vor.u32 %v1778_v62, %v1389_v61 }
  0x24   :  { %v1801_v22 = vld [vmem:[#allocation2 + $0x21c] sm:$0xf0]  ;;  %v1479_v27 = vld [vmem:[#allocation2 + $0x220] sm:$0xf0]  ;;  %v1842_v1 = vld [vmem:[#allocation2 + $0x364] sm:$0xf0] }
  0x25   :  { %v1478_v35 = vor.u32 %v1801_v22, %v1477_v21  ;;  %v1482_v40 = vor.u32 %v1797_v26, %v1479_v27  ;;  %v1213_v43 = vld [vmem:[%s1966_s0] sm:$0xf]  ;;  %v1731_v48 = vld [vmem:[%s1966_s0 + $0x4] sm:$0xf]  ;;  %818 = vmatpush.bf16.msra.mxu0 %v1222_v31  ;;  %846 = vmatpush.bf16.msra.mxu2 %v1226_v36  ;;  %v1774_v2 = vld [vmem:[#allocation2 + $0x14c] sm:$0xf]  ;;  %v1646_v7 = vor.u32 %v1842_v1, %v1645_v63 }
  0x26   :  { %v1928_v54 = vor.u32 %v1732_v44, %v1213_v43  ;;  %v1930_v57 = vor.u32 %v1731_v48, %v1215_v49  ;;  %v1391_v3 = vld [vmem:[#allocation2 + $0x168] sm:$0xf0]  ;;  %v1357_v9 = vld [vmem:[#allocation2 + $0x108] sm:$0xf] }
  0x27   :  { %832 = vmatpush.bf16.msra.mxu1 %v1478_v35  ;;  %860 = vmatpush.bf16.msra.mxu3 %v1482_v40  ;;  %v1838_v4 = vld [vmem:[#allocation2 + $0x34c] sm:$0xf]  ;;  %v1394_v8 = vor.u32 %v1774_v2, %v1391_v3  ;;  %v1770_v10 = vld [vmem:[#allocation2 + $0x124] sm:$0xf0] }
  0x28   :  { %847 = vmatmul.bf16.vlgmr.msra.gmra.mxu2 %v1928_v54  ;;  %v1647_v5 = vld [vmem:[#allocation2 + $0x368] sm:$0xf0]  ;;  %819 = vmatmul.bf16.vlgmr.msra.gmra.mxu0 %v1928_v54  ;;  %v1613_v11 = vld [vmem:[#allocation2 + $0x308] sm:$0xf]  ;;  %v1358_v18 = vor.u32 %v1770_v10, %v1357_v9  ;;  %v1791_v9 = vld [vmem:[#allocation2 + $0x1d4] sm:$0xf] }
  0x29   :  { %867 = vmatpush.bf16.msrb.mxu0 %v1454_v41  ;;  %895 = vmatpush.bf16.msrb.mxu2 %v1458_v46  ;;  %v1650_v12 = vor.u32 %v1838_v4, %v1647_v5  ;;  %v1834_v13 = vld [vmem:[#allocation2 + $0x324] sm:$0xf0]  ;;  %v1766_v14 = vld [vmem:[#allocation2 + $0x10c] sm:$0xf]  ;;  %v1461_v4 = vld [vmem:[#allocation2 + $0x1d0] sm:$0xf] }
  0x2a   :  { %861 = vmatmul.bf16.vlgmr.msra.gmra.mxu3 %v1930_v57  ;;  %833 = vmatmul.bf16.vlgmr.msra.gmra.mxu1 %v1930_v57  ;;  %v1359_v15 = vld [vmem:[#allocation2 + $0x128] sm:$0xf0]  ;;  %v1614_v19 = vor.u32 %v1834_v13, %v1613_v11  ;;  %v1325_v21 = vld [vmem:[#allocation2 + $0xc8] sm:$0xf]  ;;  %v1795_v5 = vld [vmem:[#allocation2 + $0x1ec] sm:$0xf0] }
  0x2b   :  { %881 = vmatpush.bf16.msrb.mxu1 %v1710_v45  ;;  %909 = vmatpush.bf16.msrb.mxu3 %v1714_v50  ;;  %v1830_v16 = vld [vmem:[#allocation2 + $0x30c] sm:$0xf]  ;;  %v1362_v20 = vor.u32 %v1766_v14, %v1359_v15  ;;  %v1762_v22 = vld [vmem:[#allocation2 + $0xe4] sm:$0xf0]  ;;  %v1463_v10 = vld [vmem:[#allocation2 + $0x1f0] sm:$0xf0] }
  0x2c   :  { %v1615_v17 = vld [vmem:[#allocation2 + $0x328] sm:$0xf0]  ;;  %v1581_v23 = vld [vmem:[#allocation2 + $0x2c8] sm:$0xf]  ;;  %v1326_v30 = vor.u32 %v1762_v22, %v1325_v21  ;;  %v1855_v13 = vld [vmem:[#allocation2 + $0x3d4] sm:$0xf] }
  0x2d   :  { %868 = vmatpush.bf16.msrb.mxu0 %v1422_v58  ;;  %896 = vmatpush.bf16.msrb.mxu2 %v1426_v60  ;;  %v1618_v24 = vor.u32 %v1830_v16, %v1615_v17  ;;  %v1826_v25 = vld [vmem:[#allocation2 + $0x2e4] sm:$0xf0]  ;;  %v1758_v26 = vld [vmem:[#allocation2 + $0xcc] sm:$0xf]  ;;  %v1719_v14 = vld [vmem:[#allocation2 + $0x3f0] sm:$0xf0]  ;;  %v1462_v16 = vor.u32 %v1795_v5, %v1461_v4 }
  0x2e   :  { %v1327_v27 = vld [vmem:[#allocation2 + $0xe8] sm:$0xf0]  ;;  %v1582_v31 = vor.u32 %v1826_v25, %v1581_v23  ;;  %v1293_v33 = vld [vmem:[#allocation2 + $0x88] sm:$0xf]  ;;  %v1685_v21 = vld [vmem:[#allocation2 + $0x390] sm:$0xf]  ;;  %v1722_v22 = vor.u32 %v1855_v13, %v1719_v14 }
  0x2f   :  { %882 = vmatpush.bf16.msrb.mxu1 %v1678_v59  ;;  %910 = vmatpush.bf16.msrb.mxu3 %v1682_v0  ;;  %v1822_v28 = vld [vmem:[#allocation2 + $0x2cc] sm:$0xf]  ;;  %v1330_v32 = vor.u32 %v1758_v26, %v1327_v27  ;;  %v1754_v34 = vld [vmem:[#allocation2 + $0xa4] sm:$0xf0]  ;;  %v1851_v23 = vld [vmem:[#allocation2 + $0x3ac] sm:$0xf0] }
  0x30   :  { %v1583_v29 = vld [vmem:[#allocation2 + $0x2e8] sm:$0xf0]  ;;  %v1549_v35 = vld [vmem:[#allocation2 + $0x288] sm:$0xf]  ;;  %v1294_v42 = vor.u32 %v1754_v34, %v1293_v33  ;;  %v1431_v25 = vld [vmem:[#allocation2 + $0x1b0] sm:$0xf0] }
  0x31   :  { %869 = vmatpush.bf16.msrb.mxu0 %v1390_v6  ;;  %897 = vmatpush.bf16.msrb.mxu2 %v1394_v8  ;;  %v1586_v36 = vor.u32 %v1822_v28, %v1583_v29  ;;  %v1818_v37 = vld [vmem:[#allocation2 + $0x2a4] sm:$0xf0]  ;;  %v1750_v38 = vld [vmem:[#allocation2 + $0x8c] sm:$0xf]  ;;  %v1717_v6 = vld [vmem:[#allocation2 + $0x3d0] sm:$0xf]  ;;  %v1686_v29 = vor.u32 %v1851_v23, %v1685_v21 }
  0x32   :  { %v1295_v39 = vld [vmem:[#allocation2 + $0xa8] sm:$0xf0]  ;;  %v1550_v43 = vor.u32 %v1818_v37, %v1549_v35  ;;  %v1261_v45 = vld [vmem:[#allocation2 + $0x48] sm:$0xf]  ;;  %v1859_v8 = vld [vmem:[#allocation2 + $0x3ec] sm:$0xf0] }
  0x33   :  { %883 = vmatpush.bf16.msrb.mxu1 %v1646_v7  ;;  %911 = vmatpush.bf16.msrb.mxu3 %v1650_v12  ;;  %v1814_v40 = vld [vmem:[#allocation2 + $0x28c] sm:$0xf]  ;;  %v1298_v44 = vor.u32 %v1750_v38, %v1295_v39  ;;  %v1746_v46 = vld [vmem:[#allocation2 + $0x64] sm:$0xf0]  ;;  %v1718_v17 = vor.u32 %v1859_v8, %v1717_v6  ;;  %v1847_v26 = vld [vmem:[#allocation2 + $0x394] sm:$0xf] }
  0x34   :  { %v1551_v41 = vld [vmem:[#allocation2 + $0x2a8] sm:$0xf0]  ;;  %v1517_v47 = vld [vmem:[#allocation2 + $0x248] sm:$0xf]  ;;  %v1262_v55 = vor.u32 %v1746_v46, %v1261_v45  ;;  %v1687_v27 = vld [vmem:[#allocation2 + $0x3b0] sm:$0xf0] }
  0x35   :  { %870 = vmatpush.bf16.msrb.mxu0 %v1358_v18  ;;  %898 = vmatpush.bf16.msrb.mxu2 %v1362_v20  ;;  %v1554_v48 = vor.u32 %v1814_v40, %v1551_v41  ;;  %v1810_v49 = vld [vmem:[#allocation2 + $0x264] sm:$0xf0]  ;;  %v1742_v50 = vld [vmem:[#allocation2 + $0x4c] sm:$0xf]  ;;  %v1466_v18 = vor.u32 %v1791_v9, %v1463_v10  ;;  %v1787_v20 = vld [vmem:[#allocation2 + $0x1ac] sm:$0xf0]  ;;  %v1690_v34 = vor.u32 %v1847_v26, %v1687_v27 }
  0x36   :  { %v1263_v51 = vld [vmem:[#allocation2 + $0x68] sm:$0xf0]  ;;  %v1229_v56 = vld [vmem:[#allocation2 + $0x8] sm:$0xf]  ;;  %v1518_v59 = vor.u32 %v1810_v49, %v1517_v47  ;;  %v1653_v33 = vld [vmem:[#allocation2 + $0x350] sm:$0xf] }
  0x37   :  { %884 = vmatpush.bf16.msrb.mxu1 %v1614_v19  ;;  %912 = vmatpush.bf16.msrb.mxu3 %v1618_v24  ;;  %v1806_v52 = vld [vmem:[#allocation2 + $0x24c] sm:$0xf]  ;;  %v1738_v58 = vld [vmem:[#allocation2 + $0x24] sm:$0xf0]  ;;  %v1266_v60 = vor.u32 %v1742_v50, %v1263_v51  ;;  %v1429_v19 = vld [vmem:[#allocation2 + $0x190] sm:$0xf] }
  0x38   :  { %v1519_v53 = vld [vmem:[#allocation2 + $0x268] sm:$0xf0]  ;;  %v1485_v61 = vld [vmem:[#allocation2 + $0x208] sm:$0xf]  ;;  %v1230_v7 = vor.u32 %v1738_v58, %v1229_v56  ;;  %v1783_v24 = vld [vmem:[#allocation2 + $0x194] sm:$0xf]  ;;  %v1430_v28 = vor.u32 %v1787_v20, %v1429_v19 }
  0x39   :  { %871 = vmatpush.bf16.msrb.mxu0 %v1326_v30  ;;  %899 = vmatpush.bf16.msrb.mxu2 %v1330_v32  ;;  %v1802_v62 = vld [vmem:[#allocation2 + $0x224] sm:$0xf0]  ;;  %v1734_v63 = vld [vmem:[#allocation2 + $0xc] sm:$0xf]  ;;  %v1522_v0 = vor.u32 %v1806_v52, %v1519_v53  ;;  %v1434_v30 = vor.u32 %v1783_v24, %v1431_v25  ;;  %v1779_v32 = vld [vmem:[#allocation2 + $0x16c] sm:$0xf0] }
  0x3a   :  { %v1231_v1 = vld [vmem:[#allocation2 + $0x28] sm:$0xf0]  ;;  %v1486_v11 = vor.u32 %v1802_v62, %v1485_v61  ;;  %v1843_v35 = vld [vmem:[#allocation2 + $0x36c] sm:$0xf0]  ;;  %v1399_v37 = vld [vmem:[#allocation2 + $0x170] sm:$0xf0] }
  0x3b   :  { %885 = vmatpush.bf16.msrb.mxu1 %v1582_v31  ;;  %913 = vmatpush.bf16.msrb.mxu3 %v1586_v36  ;;  %v1798_v2 = vld [vmem:[#allocation2 + $0x20c] sm:$0xf]  ;;  %v1234_v12 = vor.u32 %v1734_v63, %v1231_v1  ;;  %v1397_v31 = vld [vmem:[#allocation2 + $0x150] sm:$0xf]  ;;  %v1775_v36 = vld [vmem:[#allocation2 + $0x154] sm:$0xf]  ;;  %v1654_v41 = vor.u32 %v1843_v35, %v1653_v33 }
  0x3c   :  { %v1487_v3 = vld [vmem:[#allocation2 + $0x228] sm:$0xf0]  ;;  %v1839_v38 = vld [vmem:[#allocation2 + $0x354] sm:$0xf]  ;;  %v1398_v40 = vor.u32 %v1779_v32, %v1397_v31  ;;  %v1621_v45 = vld [vmem:[#allocation2 + $0x310] sm:$0xf] }
  0x3d   :  { %872 = vmatpush.bf16.msrb.mxu0 %v1294_v42  ;;  %900 = vmatpush.bf16.msrb.mxu2 %v1298_v44  ;;  %v1490_v15 = vor.u32 %v1798_v2, %v1487_v3  ;;  %v1655_v39 = vld [vmem:[#allocation2 + $0x370] sm:$0xf0]  ;;  %v1402_v42 = vor.u32 %v1775_v36, %v1399_v37  ;;  %v1771_v44 = vld [vmem:[#allocation2 + $0x12c] sm:$0xf0] }
  0x3e   :  { %v1658_v46 = vor.u32 %v1839_v38, %v1655_v39  ;;  %v1835_v47 = vld [vmem:[#allocation2 + $0x32c] sm:$0xf0]  ;;  %v1367_v49 = vld [vmem:[#allocation2 + $0x130] sm:$0xf0]  ;;  %v1469_v38 = vld [vmem:[#allocation2 + $0x1d8] sm:$0xf] }
  0x3f   :  { %886 = vmatpush.bf16.msrb.mxu1 %v1550_v43  ;;  %914 = vmatpush.bf16.msrb.mxu3 %v1554_v48  ;;  %v1365_v43 = vld [vmem:[#allocation2 + $0x110] sm:$0xf]  ;;  %v1767_v48 = vld [vmem:[#allocation2 + $0x114] sm:$0xf]  ;;  %v1622_v53 = vor.u32 %v1835_v47, %v1621_v45  ;;  %v1796_v39 = vld [vmem:[#allocation2 + $0x1f4] sm:$0xf0] }
  0x40   :  { %v1831_v50 = vld [vmem:[#allocation2 + $0x314] sm:$0xf]  ;;  %v1366_v52 = vor.u32 %v1771_v44, %v1365_v43  ;;  %v1333_v56 = vld [vmem:[#allocation2 + $0xd0] sm:$0xf]  ;;  %v1792_v43 = vld [vmem:[#allocation2 + $0x1dc] sm:$0xf] }
  0x41   :  { %873 = vmatpush.bf16.msrb.mxu0 %v1262_v55  ;;  %901 = vmatpush.bf16.msrb.mxu2 %v1266_v60  ;;  %v1623_v51 = vld [vmem:[#allocation2 + $0x330] sm:$0xf0]  ;;  %v1370_v55 = vor.u32 %v1767_v48, %v1367_v49  ;;  %v1763_v58 = vld [vmem:[#allocation2 + $0xec] sm:$0xf0]  ;;  %v1471_v44 = vld [vmem:[#allocation2 + $0x1f8] sm:$0xf0] }
  0x42   :  { %v1626_v60 = vor.u32 %v1831_v50, %v1623_v51  ;;  %v1827_v61 = vld [vmem:[#allocation2 + $0x2ec] sm:$0xf0]  ;;  %v1759_v62 = vld [vmem:[#allocation2 + $0xd4] sm:$0xf]  ;;  %v1334_v2 = vor.u32 %v1763_v58, %v1333_v56  ;;  %v1856_v47 = vld [vmem:[#allocation2 + $0x3dc] sm:$0xf]  ;;  %v1470_v50 = vor.u32 %v1796_v39, %v1469_v38 }
  0x43   :  { %887 = vmatpush.bf16.msrb.mxu1 %v1518_v59  ;;  %915 = vmatpush.bf16.msrb.mxu3 %v1522_v0  ;;  %v1589_v59 = vld [vmem:[#allocation2 + $0x2d0] sm:$0xf]  ;;  %v1335_v63 = vld [vmem:[#allocation2 + $0xf0] sm:$0xf0]  ;;  %v1727_v48 = vld [vmem:[#allocation2 + $0x3f8] sm:$0xf0] }
  0x44   :  { %v1823_v0 = vld [vmem:[#allocation2 + $0x2d4] sm:$0xf]  ;;  %v1590_v3 = vor.u32 %v1827_v61, %v1589_v59  ;;  %v1338_v4 = vor.u32 %v1759_v62, %v1335_v63  ;;  %v1301_v5 = vld [vmem:[#allocation2 + $0x90] sm:$0xf]  ;;  %v1693_v56 = vld [vmem:[#allocation2 + $0x398] sm:$0xf]  ;;  %v1730_v58 = vor.u32 %v1856_v47, %v1727_v48 }
  0x45   :  { %874 = vmatpush.bf16.msrb.mxu0 %v1230_v7  ;;  %902 = vmatpush.bf16.msrb.mxu2 %v1234_v12  ;;  %v1591_v1 = vld [vmem:[#allocation2 + $0x2f0] sm:$0xf0]  ;;  %v1755_v6 = vld [vmem:[#allocation2 + $0xac] sm:$0xf0]  ;;  %v1852_v59 = vld [vmem:[#allocation2 + $0x3b4] sm:$0xf0] }
  0x46   :  { %v1557_v7 = vld [vmem:[#allocation2 + $0x290] sm:$0xf]  ;;  %v1594_v8 = vor.u32 %v1823_v0, %v1591_v1  ;;  %v1751_v10 = vld [vmem:[#allocation2 + $0x94] sm:$0xf]  ;;  %v1302_v14 = vor.u32 %v1755_v6, %v1301_v5  ;;  %v1439_v61 = vld [vmem:[#allocation2 + $0x1b8] sm:$0xf0]  ;;  %v1694_v1 = vor.u32 %v1852_v59, %v1693_v56 }
  0x47   :  { %888 = vmatpush.bf16.msrb.mxu1 %v1486_v11  ;;  %916 = vmatpush.bf16.msrb.mxu3 %v1490_v15  ;;  %v1819_v9 = vld [vmem:[#allocation2 + $0x2ac] sm:$0xf0]  ;;  %v1303_v11 = vld [vmem:[#allocation2 + $0xb0] sm:$0xf0]  ;;  %v1848_v62 = vld [vmem:[#allocation2 + $0x39c] sm:$0xf] }
  0x48   :  { %875 = vmatmul.bf16.vlgmr.msrb.gmra.mxu0 %v1928_v54  ;;  %903 = vmatmul.bf16.vlgmr.msrb.gmra.mxu2 %v1928_v54  ;;  %v1815_v12 = vld [vmem:[#allocation2 + $0x294] sm:$0xf]  ;;  %v1558_v15 = vor.u32 %v1819_v9, %v1557_v7  ;;  %v1525_v19 = vld [vmem:[#allocation2 + $0x250] sm:$0xf]  ;;  %v1695_v63 = vld [vmem:[#allocation2 + $0x3b8] sm:$0xf0] }
  0x49   :  { %923 = vmatpush.bf16.msra.mxu0 %v1462_v16  ;;  %951 = vmatpush.bf16.msra.mxu2 %v1466_v18  ;;  %v1559_v13 = vld [vmem:[#allocation2 + $0x2b0] sm:$0xf0]  ;;  %v1306_v16 = vor.u32 %v1751_v10, %v1303_v11  ;;  %v1747_v18 = vld [vmem:[#allocation2 + $0x6c] sm:$0xf0]  ;;  %v1661_v5 = vld [vmem:[#allocation2 + $0x358] sm:$0xf]  ;;  %v1698_v6 = vor.u32 %v1848_v62, %v1695_v63 }
  0x4a   :  { %889 = vmatmul.bf16.vlgmr.msrb.gmra.mxu1 %v1930_v57  ;;  %917 = vmatmul.bf16.vlgmr.msrb.gmra.mxu3 %v1930_v57  ;;  %v1562_v20 = vor.u32 %v1815_v12, %v1559_v13  ;;  %v1811_v21 = vld [vmem:[#allocation2 + $0x26c] sm:$0xf0]  ;;  %v1271_v23 = vld [vmem:[#allocation2 + $0x70] sm:$0xf0]  ;;  %v1844_v7 = vld [vmem:[#allocation2 + $0x374] sm:$0xf0] }
  0x4b   :  { %937 = vmatpush.bf16.msra.mxu1 %v1718_v17  ;;  %965 = vmatpush.bf16.msra.mxu3 %v1722_v22  ;;  %v1269_v17 = vld [vmem:[#allocation2 + $0x50] sm:$0xf]  ;;  %v1743_v22 = vld [vmem:[#allocation2 + $0x54] sm:$0xf]  ;;  %v1407_v9 = vld [vmem:[#allocation2 + $0x178] sm:$0xf0]  ;;  %v1662_v13 = vor.u32 %v1844_v7, %v1661_v5 }
  0x4c   :  { %v1807_v24 = vld [vmem:[#allocation2 + $0x254] sm:$0xf]  ;;  %v1270_v26 = vor.u32 %v1747_v18, %v1269_v17  ;;  %v1237_v27 = vld [vmem:[#allocation2 + $0x10] sm:$0xf]  ;;  %v1840_v10 = vld [vmem:[#allocation2 + $0x35c] sm:$0xf] }
  0x4d   :  { %924 = vmatpush.bf16.msra.mxu0 %v1430_v28  ;;  %952 = vmatpush.bf16.msra.mxu2 %v1434_v30  ;;  %v1527_v25 = vld [vmem:[#allocation2 + $0x270] sm:$0xf0]  ;;  %v1739_v28 = vld [vmem:[#allocation2 + $0x2c] sm:$0xf0]  ;;  %v1274_v30 = vor.u32 %v1743_v22, %v1271_v23  ;;  %v1663_v11 = vld [vmem:[#allocation2 + $0x378] sm:$0xf0] }
  0x4e   :  { %v1493_v31 = vld [vmem:[#allocation2 + $0x210] sm:$0xf]  ;;  %v1735_v33 = vld [vmem:[#allocation2 + $0x14] sm:$0xf]  ;;  %v1629_v17 = vld [vmem:[#allocation2 + $0x318] sm:$0xf]  ;;  %v1666_v18 = vor.u32 %v1840_v10, %v1663_v11 }
  0x4f   :  { %938 = vmatpush.bf16.msra.mxu1 %v1686_v29  ;;  %966 = vmatpush.bf16.msra.mxu3 %v1690_v34  ;;  %v1526_v29 = vor.u32 %v1811_v21, %v1525_v19  ;;  %v1803_v32 = vld [vmem:[#allocation2 + $0x22c] sm:$0xf0]  ;;  %v1530_v34 = vor.u32 %v1807_v24, %v1527_v25  ;;  %v1239_v35 = vld [vmem:[#allocation2 + $0x30] sm:$0xf0]  ;;  %v1836_v19 = vld [vmem:[#allocation2 + $0x334] sm:$0xf0] }
  0x50   :  { %v1799_v36 = vld [vmem:[#allocation2 + $0x214] sm:$0xf]  ;;  %v1494_v45 = vor.u32 %v1803_v32, %v1493_v31  ;;  %v1375_v21 = vld [vmem:[#allocation2 + $0x138] sm:$0xf0]  ;;  %v1630_v25 = vor.u32 %v1836_v19, %v1629_v17  ;;  %v1828_v31 = vld [vmem:[#allocation2 + $0x2f4] sm:$0xf0] }
  0x51   :  { %925 = vmatpush.bf16.msra.mxu0 %v1398_v40  ;;  %953 = vmatpush.bf16.msra.mxu2 %v1402_v42  ;;  %v1495_v37 = vld [vmem:[#allocation2 + $0x230] sm:$0xf0]  ;;  %v1725_v40 = vld [vmem:[#allocation2 + $0x3d8] sm:$0xf]  ;;  %v1832_v22 = vld [vmem:[#allocation2 + $0x31c] sm:$0xf] }
  0x52   :  { %v1860_v42 = vld [vmem:[#allocation2 + $0x3f4] sm:$0xf0]  ;;  %v1498_v49 = vor.u32 %v1799_v36, %v1495_v37  ;;  %v1631_v23 = vld [vmem:[#allocation2 + $0x338] sm:$0xf0] }
  0x53   :  { %939 = vmatpush.bf16.msra.mxu1 %v1654_v41  ;;  %967 = vmatpush.bf16.msra.mxu3 %v1658_v46  ;;  %v1238_v41 = vor.u32 %v1739_v28, %v1237_v27  ;;  %v1242_v46 = vor.u32 %v1735_v33, %v1239_v35  ;;  %v1726_v51 = vor.u32 %v1860_v42, %v1725_v40  ;;  %v1341_v27 = vld [vmem:[#allocation2 + $0xd8] sm:$0xf]  ;;  %v1760_v32 = vld [vmem:[#allocation2 + $0xdc] sm:$0xf] }
  0x54   :  { %v1764_v28 = vld [vmem:[#allocation2 + $0xf4] sm:$0xf0]  ;;  %v1343_v33 = vld [vmem:[#allocation2 + $0xf8] sm:$0xf0] }
  0x55   :  { %926 = vmatpush.bf16.msra.mxu0 %v1366_v52  ;;  %954 = vmatpush.bf16.msra.mxu2 %v1370_v55  ;;  %v1474_v52 = vor.u32 %v1792_v43, %v1471_v44  ;;  %v1788_v55 = vld [vmem:[#allocation2 + $0x1b4] sm:$0xf0]  ;;  %v1599_v35 = vld [vmem:[#allocation2 + $0x2f8] sm:$0xf0]  ;;  %v1342_v36 = vor.u32 %v1764_v28, %v1341_v27  ;;  %v1346_v38 = vor.u32 %v1760_v32, %v1343_v33 }
  0x56   :  { %v1309_v39 = vld [vmem:[#allocation2 + $0x98] sm:$0xf]  ;;  %v1752_v44 = vld [vmem:[#allocation2 + $0x9c] sm:$0xf] }
  0x57   :  { %940 = vmatpush.bf16.msra.mxu1 %v1622_v53  ;;  %968 = vmatpush.bf16.msra.mxu3 %v1626_v60  ;;  %v1437_v53 = vld [vmem:[#allocation2 + $0x198] sm:$0xf]  ;;  %v1784_v60 = vld [vmem:[#allocation2 + $0x19c] sm:$0xf] }
  0x58   :  { %v1438_v0 = vor.u32 %v1788_v55, %v1437_v53  ;;  %v1756_v40 = vld [vmem:[#allocation2 + $0xb4] sm:$0xf0]  ;;  %v1567_v47 = vld [vmem:[#allocation2 + $0x2b8] sm:$0xf0] }
  0x59   :  { %927 = vmatpush.bf16.msra.mxu0 %v1334_v2  ;;  %955 = vmatpush.bf16.msra.mxu2 %v1338_v4  ;;  %v1442_v2 = vor.u32 %v1784_v60, %v1439_v61  ;;  %v1780_v4 = vld [vmem:[#allocation2 + $0x174] sm:$0xf0]  ;;  %v1310_v48 = vor.u32 %v1756_v40, %v1309_v39  ;;  %v1279_v59 = vld [vmem:[#allocation2 + $0x78] sm:$0xf0] }
  0x5a   :  { %v1820_v43 = vld [vmem:[#allocation2 + $0x2b4] sm:$0xf0]  ;;  %v1808_v60 = vld [vmem:[#allocation2 + $0x25c] sm:$0xf] }
  0x5b   :  { %941 = vmatpush.bf16.msra.mxu1 %v1590_v3  ;;  %969 = vmatpush.bf16.msra.mxu3 %v1594_v8  ;;  %v1405_v3 = vld [vmem:[#allocation2 + $0x158] sm:$0xf]  ;;  %v1776_v8 = vld [vmem:[#allocation2 + $0x15c] sm:$0xf] }
  0x5c   :  { %v1406_v12 = vor.u32 %v1780_v4, %v1405_v3  ;;  %v1533_v53 = vld [vmem:[#allocation2 + $0x258] sm:$0xf]  ;;  %v1535_v61 = vld [vmem:[#allocation2 + $0x278] sm:$0xf0] }
  0x5d   :  { %928 = vmatpush.bf16.msra.mxu0 %v1302_v14  ;;  %956 = vmatpush.bf16.msra.mxu2 %v1306_v16  ;;  %v1410_v14 = vor.u32 %v1776_v8, %v1407_v9  ;;  %v1772_v16 = vld [vmem:[#allocation2 + $0x134] sm:$0xf0]  ;;  %v1538_v4 = vor.u32 %v1808_v60, %v1535_v61  ;;  %v1247_v7 = vld [vmem:[#allocation2 + $0x38] sm:$0xf0] }
  0x5e   :  { %v1812_v56 = vld [vmem:[#allocation2 + $0x274] sm:$0xf0]  ;;  %v1800_v8 = vld [vmem:[#allocation2 + $0x21c] sm:$0xf] }
  0x5f   :  { %942 = vmatpush.bf16.msra.mxu1 %v1558_v15  ;;  %970 = vmatpush.bf16.msra.mxu3 %v1562_v20  ;;  %v1373_v15 = vld [vmem:[#allocation2 + $0x118] sm:$0xf]  ;;  %v1768_v20 = vld [vmem:[#allocation2 + $0x11c] sm:$0xf]  ;;  %v1534_v63 = vor.u32 %v1812_v56, %v1533_v53 }
  0x60   :  { %v1374_v24 = vor.u32 %v1772_v16, %v1373_v15  ;;  %v1501_v3 = vld [vmem:[#allocation2 + $0x218] sm:$0xf]  ;;  %v1503_v9 = vld [vmem:[#allocation2 + $0x238] sm:$0xf0] }
  0x61   :  { %929 = vmatpush.bf16.msra.mxu0 %v1270_v26  ;;  %957 = vmatpush.bf16.msra.mxu2 %v1274_v30  ;;  %v1378_v26 = vor.u32 %v1768_v20, %v1375_v21  ;;  %v1634_v30 = vor.u32 %v1832_v22, %v1631_v23  ;;  %v1804_v5 = vld [vmem:[#allocation2 + $0x234] sm:$0xf0]  ;;  %v1060_v21 = vld [vmem:[%s1968_s2 + $0x8] sm:$0xff] }
  0x62   :  { %v1502_v11 = vor.u32 %v1804_v5, %v1501_v3  ;;  %v1069_v22 = vunpack.c.l.b16 %v1060_v21  ;;  %v1062_v3 = vld [vmem:[%s1968_s2 + $0x18] sm:$0xff] }
  0x63   :  { %943 = vmatpush.bf16.msra.mxu1 %v1526_v29  ;;  %971 = vmatpush.bf16.msra.mxu3 %v1530_v34  ;;  %v1597_v29 = vld [vmem:[#allocation2 + $0x2d8] sm:$0xf]  ;;  %v1824_v34 = vld [vmem:[#allocation2 + $0x2dc] sm:$0xf]  ;;  %v1074_v5 = vunpack.c.h.b16 %v1062_v3 }
  0x64   :  { %v1598_v37 = vor.u32 %v1828_v31, %v1597_v29  ;;  %v1602_v42 = vor.u32 %v1824_v34, %v1599_v35  ;;  %v1070_v29 = vunpack.c.h.b16 %v1060_v21 }
  0x65   :  { %930 = vmatpush.bf16.msra.mxu0 %v1238_v41  ;;  %958 = vmatpush.bf16.msra.mxu2 %v1242_v46  ;;  %v1565_v41 = vld [vmem:[#allocation2 + $0x298] sm:$0xf]  ;;  %v1816_v46 = vld [vmem:[#allocation2 + $0x29c] sm:$0xf] }
  0x66   :  { %v1570_v55 = vor.u32 %v1816_v46, %v1567_v47  ;;  %v1078_v32 = vpack.c.b16 %v1070_v29, %v1070_v29 }
  0x67   :  { %944 = vmatpush.bf16.msra.mxu1 %v1494_v45  ;;  %972 = vmatpush.bf16.msra.mxu3 %v1498_v49  ;;  %v1311_v45 = vld [vmem:[#allocation2 + $0xb8] sm:$0xf0]  ;;  %v1566_v49 = vor.u32 %v1820_v43, %v1565_v41 }
  0x68   :  { %931 = vmatmul.bf16.vlgmr.msra.gmra.mxu0 %v1928_v54  ;;  %959 = vmatmul.bf16.vlgmr.msra.gmra.mxu2 %v1928_v54 }
  0x69   :  { %979 = vmatpush.bf16.msrb.mxu0 %v1470_v50  ;;  %1007 = vmatpush.bf16.msrb.mxu2 %v1474_v52  ;;  %v1314_v50 = vor.u32 %v1752_v44, %v1311_v45  ;;  %v1748_v52 = vld [vmem:[#allocation2 + $0x74] sm:$0xf0] }
  0x6a   :  { %945 = vmatmul.bf16.vlgmr.msra.gmra.mxu1 %v1930_v57  ;;  %973 = vmatmul.bf16.vlgmr.msra.gmra.mxu3 %v1930_v57 }
  0x6b   :  { %993 = vmatpush.bf16.msrb.mxu1 %v1726_v51  ;;  %1021 = vmatpush.bf16.msrb.mxu3 %v1730_v58  ;;  %v1277_v51 = vld [vmem:[#allocation2 + $0x58] sm:$0xf]  ;;  %v1744_v58 = vld [vmem:[#allocation2 + $0x5c] sm:$0xf] }
  0x6c   :  { %v1278_v62 = vor.u32 %v1748_v52, %v1277_v51 }
  0x6d   :  { %980 = vmatpush.bf16.msrb.mxu0 %v1438_v0  ;;  %1008 = vmatpush.bf16.msrb.mxu2 %v1442_v2  ;;  %v1282_v0 = vor.u32 %v1744_v58, %v1279_v59  ;;  %v1740_v2 = vld [vmem:[#allocation2 + $0x34] sm:$0xf0] }
  0x6f   :  { %994 = vmatpush.bf16.msrb.mxu1 %v1694_v1  ;;  %1022 = vmatpush.bf16.msrb.mxu3 %v1698_v6  ;;  %v1245_v1 = vld [vmem:[#allocation2 + $0x18] sm:$0xf]  ;;  %v1736_v6 = vld [vmem:[#allocation2 + $0x1c] sm:$0xf] }
  0x70   :  { %v1246_v10 = vor.u32 %v1740_v2, %v1245_v1 }
  0x71   :  { %981 = vmatpush.bf16.msrb.mxu0 %v1406_v12  ;;  %1009 = vmatpush.bf16.msrb.mxu2 %v1410_v14  ;;  %v1250_v12 = vor.u32 %v1736_v6, %v1247_v7  ;;  %v1059_v14 = vld [vmem:[%s1968_s2] sm:$0xff]  ;;  %v1082_v7 = vpack.c.b16 %v1074_v5, %v1074_v5 }
  0x72   :  { %v1067_v15 = vunpack.c.l.b16 %v1059_v14  ;;  %v1068_v16 = vunpack.c.h.b16 %v1059_v14 }
  0x73   :  { %995 = vmatpush.bf16.msrb.mxu1 %v1662_v13  ;;  %1023 = vmatpush.bf16.msrb.mxu3 %v1666_v18  ;;  %v1506_v13 = vor.u32 %v1800_v8, %v1503_v9 }
  0x74   :  { %v1075_v17 = vpack.c.b16 %v1067_v15, %v1067_v15  ;;  %v1076_v18 = vpack.c.b16 %v1068_v16, %v1068_v16 }
  0x75   :  { %982 = vmatpush.bf16.msrb.mxu0 %v1374_v24  ;;  %1010 = vmatpush.bf16.msrb.mxu2 %v1378_v26  ;;  %v1077_v24 = vpack.c.b16 %v1069_v22, %v1069_v22 }
  0x77   :  { %996 = vmatpush.bf16.msrb.mxu1 %v1630_v25  ;;  %1024 = vmatpush.bf16.msrb.mxu3 %v1634_v30 }
  0x79   :  { %983 = vmatpush.bf16.msrb.mxu0 %v1342_v36  ;;  %1011 = vmatpush.bf16.msrb.mxu2 %v1346_v38 }
  0x7b   :  { %997 = vmatpush.bf16.msrb.mxu1 %v1598_v37  ;;  %1025 = vmatpush.bf16.msrb.mxu3 %v1602_v42  ;;  %v1061_v42 = vld [vmem:[%s1968_s2 + $0x10] sm:$0xff] }
  0x7c   :  { %v1071_v43 = vunpack.c.l.b16 %v1061_v42  ;;  %v1072_v52 = vunpack.c.h.b16 %v1061_v42 }
  0x7d   :  { %984 = vmatpush.bf16.msrb.mxu0 %v1310_v48  ;;  %1012 = vmatpush.bf16.msrb.mxu2 %v1314_v50 }
  0x7e   :  { %v1079_v45 = vpack.c.b16 %v1071_v43, %v1071_v43 }
  0x7f   :  { %998 = vmatpush.bf16.msrb.mxu1 %v1566_v49  ;;  %1026 = vmatpush.bf16.msrb.mxu3 %v1570_v55  ;;  %v1080_v55 = vpack.c.b16 %v1072_v52, %v1072_v52 }
  0x81   :  { %985 = vmatpush.bf16.msrb.mxu0 %v1278_v62  ;;  %1013 = vmatpush.bf16.msrb.mxu2 %v1282_v0 }
  0x83   :  { %999 = vmatpush.bf16.msrb.mxu1 %v1534_v63  ;;  %1027 = vmatpush.bf16.msrb.mxu3 %v1538_v4  ;;  %v1073_v4 = vunpack.c.l.b16 %v1062_v3 }
  0x85   :  { %986 = vmatpush.bf16.msrb.mxu0 %v1246_v10  ;;  %1014 = vmatpush.bf16.msrb.mxu2 %v1250_v12  ;;  %v1081_v6 = vpack.c.b16 %v1073_v4, %v1073_v4 }
  0x87   :  { %1000 = vmatpush.bf16.msrb.mxu1 %v1502_v11  ;;  %1028 = vmatpush.bf16.msrb.mxu3 %v1506_v13 }
  0x88   :  { %987 = vmatmul.bf16.vlgmr.msrb.gmra.mxu0 %v1928_v54  ;;  %1015 = vmatmul.bf16.vlgmr.msrb.gmra.mxu2 %v1928_v54 }
  0x89   :  { %1098 = vmatpush.bf16.xpose.msra.mxu0 %v1075_v17  ;;  %1126 = vmatpush.bf16.xpose.msra.mxu2 %v1077_v24 }
  0x8a   :  { %1001 = vmatmul.bf16.vlgmr.msrb.gmra.mxu1 %v1930_v57  ;;  %1029 = vmatmul.bf16.vlgmr.msrb.gmra.mxu3 %v1930_v57 }
  0x8b   :  { %1112 = vmatpush.bf16.xpose.msra.mxu1 %v1076_v18  ;;  %1140 = vmatpush.bf16.xpose.msra.mxu3 %v1078_v32 }
  0x91   :  { %1154 = vmatpush.bf16.xpose.msrb.mxu0 %v1079_v45  ;;  %1182 = vmatpush.bf16.xpose.msrb.mxu2 %v1081_v6 }
  0x93   :  { %1168 = vmatpush.bf16.xpose.msrb.mxu1 %v1080_v55  ;;  %1196 = vmatpush.bf16.xpose.msrb.mxu3 %v1082_v7 }
  0xa5   :  { %v820_v19 = vpop.f32.mrf.mxu0 }
  0xa7   :  { %v834_v20 = vpop.f32.mrf.mxu1 }
  0xa8   :  { %v835_v23 = vadd.f32 %v834_v20, %v820_v19 }
  0xaa   :  { %v1035_v27 = vmax.f32 %v835_v23, 0.0 }
  0xab   :  { %v848_v54 = vpop.f32.mrf.mxu2 }
  0xad   :  { %v862_v57 = vpop.f32.mrf.mxu3  ;;  %v822_v25 = vpop.f32.mrf.mxu0 }
  0xae   :  { %v863_v30 = vadd.f32 %v862_v57, %v848_v54 }
  0xaf   :  { %v836_v26 = vpop.f32.mrf.mxu1 }
  0xb0   :  { %v837_v28 = vadd.f32 %v836_v26, %v822_v25  ;;  %v1036_v36 = vmax.f32 %v863_v30, 0.0 }
  0xb2   :  { %v1043_v31 = vmax.f32 %v837_v28, 0.0 }
  0xb3   :  { %v850_v33 = vpop.f32.mrf.mxu2 }
  0xb4   :  { %v1051_v34 = vpack.c.bf16 %v1043_v31, %v1035_v27 }
  0xb5   :  { %v864_v35 = vpop.f32.mrf.mxu3 }
  0xb6   :  { %v865_v37 = vadd.f32 %v864_v35, %v850_v33  ;;  %1099 = vmatmul.bf16.vlgmr.msra.gmra.mxu0 %v1051_v34 }
  0xb8   :  { %v1044_v38 = vmax.f32 %v865_v37, 0.0 }
  0xba   :  { %v1052_v39 = vpack.c.bf16 %v1044_v38, %v1036_v36 }
  0xbc   :  { %1113 = vmatmul.bf16.vlgmr.msra.gmra.mxu1 %v1052_v39 }
  0xc5   :  { %v876_v40 = vpop.f32.mrf.mxu0 }
  0xc7   :  { %v890_v41 = vpop.f32.mrf.mxu1 }
  0xc8   :  { %v891_v44 = vadd.f32 %v890_v41, %v876_v40 }
  0xca   :  { %v1037_v50 = vmax.f32 %v891_v44, 0.0 }
  0xcb   :  { %v904_v46 = vpop.f32.mrf.mxu2 }
  0xcd   :  { %v918_v47 = vpop.f32.mrf.mxu3  ;;  %v878_v48 = vpop.f32.mrf.mxu0 }
  0xce   :  { %v919_v56 = vadd.f32 %v918_v47, %v904_v46 }
  0xcf   :  { %v892_v49 = vpop.f32.mrf.mxu1 }
  0xd0   :  { %v893_v51 = vadd.f32 %v892_v49, %v878_v48  ;;  %v1038_v61 = vmax.f32 %v919_v56, 0.0 }
  0xd2   :  { %v1045_v53 = vmax.f32 %v893_v51, 0.0 }
  0xd3   :  { %v906_v59 = vpop.f32.mrf.mxu2 }
  0xd4   :  { %v1053_v58 = vpack.c.bf16 %v1045_v53, %v1037_v50 }
  0xd5   :  { %v920_v60 = vpop.f32.mrf.mxu3 }
  0xd6   :  { %1127 = vmatmul.bf16.vlgmr.msra.gmra.mxu2 %v1053_v58  ;;  %v921_v62 = vadd.f32 %v920_v60, %v906_v59 }
  0xd8   :  { %v1046_v63 = vmax.f32 %v921_v62, 0.0 }
  0xda   :  { %v1054_v0 = vpack.c.bf16 %v1046_v63, %v1038_v61 }
  0xdc   :  { %1141 = vmatmul.bf16.vlgmr.msra.gmra.mxu3 %v1054_v0 }
  0xe5   :  { %v932_v1 = vpop.f32.mrf.mxu0 }
  0xe7   :  { %v946_v2 = vpop.f32.mrf.mxu1 }
  0xe8   :  { %v947_v8 = vadd.f32 %v946_v2, %v932_v1 }
  0xea   :  { %v1039_v13 = vmax.f32 %v947_v8, 0.0 }
  0xeb   :  { %v960_v9 = vpop.f32.mrf.mxu2 }
  0xed   :  { %v974_v10 = vpop.f32.mrf.mxu3  ;;  %v934_v11 = vpop.f32.mrf.mxu0 }
  0xee   :  { %v975_v16 = vadd.f32 %v974_v10, %v960_v9 }
  0xef   :  { %v948_v12 = vpop.f32.mrf.mxu1 }
  0xf0   :  { %v949_v14 = vadd.f32 %v948_v12, %v934_v11  ;;  %v1040_v20 = vmax.f32 %v975_v16, 0.0 }
  0xf2   :  { %v1047_v15 = vmax.f32 %v949_v14, 0.0 }
  0xf3   :  { %v962_v18 = vpop.f32.mrf.mxu2 }
  0xf4   :  { %v1055_v17 = vpack.c.bf16 %v1047_v15, %v1039_v13 }
  0xf5   :  { %v976_v19 = vpop.f32.mrf.mxu3 }
  0xf6   :  { %1155 = vmatmul.bf16.vlgmr.msrb.gmra.mxu0 %v1055_v17  ;;  %v977_v21 = vadd.f32 %v976_v19, %v962_v18 }
  0xf8   :  { %v1048_v22 = vmax.f32 %v977_v21, 0.0 }
  0xfa   :  { %v1056_v54 = vpack.c.bf16 %v1048_v22, %v1040_v20 }
  0xfc   :  { %1169 = vmatmul.bf16.vlgmr.msrb.gmra.mxu1 %v1056_v54 }
 0x105   :  { %v988_v23 = vpop.f32.mrf.mxu0 }
 0x107   :  { %v1002_v57 = vpop.f32.mrf.mxu1 }
 0x108   :  { %v1003_v25 = vadd.f32 %v1002_v57, %v988_v23 }
 0x10a   :  { %v1041_v30 = vmax.f32 %v1003_v25, 0.0 }
 0x10b   :  { %v1016_v24 = vpop.f32.mrf.mxu2 }
 0x10d   :  { %v1030_v26 = vpop.f32.mrf.mxu3  ;;  %v990_v27 = vpop.f32.mrf.mxu0 }
 0x10e   :  { %v1031_v33 = vadd.f32 %v1030_v26, %v1016_v24 }
 0x10f   :  { %v1004_v28 = vpop.f32.mrf.mxu1 }
 0x110   :  { %v1005_v29 = vadd.f32 %v1004_v28, %v990_v27  ;;  %v1042_v37 = vmax.f32 %v1031_v33, 0.0 }
 0x112   :  { %v1049_v31 = vmax.f32 %v1005_v29, 0.0 }
 0x113   :  { %v1018_v34 = vpop.f32.mrf.mxu2 }
 0x114   :  { %v1057_v32 = vpack.c.bf16 %v1049_v31, %v1041_v30 }
 0x115   :  { %v1032_v35 = vpop.f32.mrf.mxu3 }
 0x116   :  { %1183 = vmatmul.bf16.vlgmr.msrb.gmra.mxu2 %v1057_v32  ;;  %v1033_v36 = vadd.f32 %v1032_v35, %v1018_v34 }
 0x118   :  { %v1050_v38 = vmax.f32 %v1033_v36, 0.0 }
 0x11a   :  { %v1058_v39 = vpack.c.bf16 %v1050_v38, %v1042_v37 }
 0x11c   :  { %1197 = vmatmul.bf16.vlgmr.msrb.gmra.mxu3 %v1058_v39 }
 0x133   :  { %v1100_v40 = vpop.f32.mrf.mxu0 }
 0x139   :  { %v1114_v41 = vpop.f32.mrf.mxu1 }
 0x13a   :  { %v1115_v47 = vadd.f32 %v1114_v41, %v1100_v40 }
 0x13b   :  { %v1102_v43 = vpop.f32.mrf.mxu0 }
 0x141   :  { %v1116_v45 = vpop.f32.mrf.mxu1 }
 0x142   :  { %v1117_v56 = vadd.f32 %v1116_v45, %v1102_v43 }
 0x159   :  { %v1128_v42 = vpop.f32.mrf.mxu2 }
 0x15a   :  { %v1129_v49 = vadd.f32 %v1128_v42, %v1115_v47 }
 0x15f   :  { %v1142_v44 = vpop.f32.mrf.mxu3 }
 0x160   :  { %v1143_v52 = vadd.f32 %v1142_v44, %v1129_v49 }
 0x161   :  { %v1130_v46 = vpop.f32.mrf.mxu2 }
 0x162   :  { %v1131_v59 = vadd.f32 %v1130_v46, %v1117_v56 }
 0x167   :  { %v1144_v50 = vpop.f32.mrf.mxu3 }
 0x168   :  { %v1145_v63 = vadd.f32 %v1144_v50, %v1131_v59 }
 0x173   :  { %v1156_v48 = vpop.f32.mrf.mxu0 }
 0x174   :  { %v1157_v55 = vadd.f32 %v1156_v48, %v1143_v52 }
 0x179   :  { %v1170_v51 = vpop.f32.mrf.mxu1 }
 0x17a   :  { %v1171_v58 = vadd.f32 %v1170_v51, %v1157_v55 }
 0x17b   :  { %v1158_v61 = vpop.f32.mrf.mxu0 }
 0x17c   :  { %v1159_v2 = vadd.f32 %v1158_v61, %v1145_v63 }
 0x181   :  { %v1172_v1 = vpop.f32.mrf.mxu1 }
 0x182   :  { %v1173_v4 = vadd.f32 %v1172_v1, %v1159_v2 }
 0x199   :  { %v1184_v53 = vpop.f32.mrf.mxu2 }
 0x19a   :  { %v1185_v60 = vadd.f32 %v1184_v53, %v1171_v58 }
 0x19f   :  { %v1198_v62 = vpop.f32.mrf.mxu3 }
 0x1a0   :  { %v1199_v0 = vadd.f32 %v1198_v62, %v1185_v60 }
 0x1a1   :  { %v1186_v3 = vpop.f32.mrf.mxu2 }
 0x1a2   :  { %1204 = vst.msk [vmem:[%s1969_s3] sm:$0xff] %vm1203_vm0, %v1199_v0  ;;  %v1187_v5 = vadd.f32 %v1186_v3, %v1173_v4 }
 0x1a7   :  { %v1200_v6 = vpop.f32.mrf.mxu3 }
 0x1a8   :  { %v1201_v7 = vadd.f32 %v1200_v6, %v1187_v5 }
 0x1aa   :  { %1205 = vst.msk [vmem:[%s1969_s3 + $0x8] sm:$0xff] %vm1203_vm0, %v1201_v7 }
 0x1ab   :  { %1210 = vsyncpa [#allocation3], 1 }

</bundles_post_ra>
